<compile_context>
chip_gen: v6e
topology: v6e:2x2x1
jax: 0.10.0
libtpu: 0.0.40
codegen_flags: <defaults>
</compile_context>

<pallas_src>
import functools

import jax
import jax.numpy as jnp
from jax.experimental import pallas as pl
from jax.experimental.pallas import tpu as pltpu


# ----------------------------- configuration --------------------------------
EMB = 16                            # emb_size
HEADS = 4                           # n_heads
HEAD_DIM = EMB // HEADS             # 4
SCALING = float(HEAD_DIM) ** 0.5    # (emb_size // n_heads) ** (1/2) == 2.0
BATCH = 2
SEQ = 8


# ------------------------------ Pallas kernel --------------------------------
def _mha_kernel(x_ref, w_ref, b_ref, o_ref, *, B, N, H, D, E):
    # x_ref: (M, E)       M = B*N tokens, batch folded (m = b*N + n)
    # w_ref: (E, 4E)      columns = [Wq | Wk | Wv | Wpro^T]; within Q/K/V the
    #                     column is c = h*D + d; 1/scaling folded into Q cols.
    # b_ref: (1, 4E)      [bq | bk | bv | bpro], same layout.
    # o_ref: (M, E)
    M = B * N
    x = x_ref[...]                                     # (M, E)
    w = w_ref[...]                                     # (E, 4E)
    b = b_ref[...]                                     # (1, 4E)

    # --- ONE fused QKV projection: (M,E) x (E,3E) MXU matmul -----------------
    qkv = jnp.dot(x, w[:, :3 * E],
                  preferred_element_type=jnp.float32) + b[:, :3 * E]   # (M, 3E)

    # Regroup columns into per-(head, batch) slabs (H*B, N, D) so attention is
    # ONE batched score einsum + ONE batched P@V einsum.  Static lane slices +
    # leading-axis stack; the (H, B*N, D) -> (H*B, N, D) reshape is a pure
    # leading-dim regroup.  NOTE: this stays a cheap relayout only because
    # N == 8 matches the f32 sublane tile (fragile if N changes).
    def heads_first(base):
        slabs = [qkv[:, base + h * D: base + (h + 1) * D] for h in range(H)]
        return jnp.stack(slabs, axis=0).reshape(H * B, N, D)   # g = h*B + b

    q = heads_first(0 * E)                             # scaling already folded
    k = heads_first(1 * E)
    v = heads_first(2 * E)

    # --- per-(head,batch) attention with numerically-stable softmax ----------
    s = jnp.einsum('gqd,gkd->gqk', q, k,
                   preferred_element_type=jnp.float32)          # (H*B, N, N)
    s = s - jnp.max(s, axis=-1, keepdims=True)
    p = jnp.exp(s)
    p = p * pl.reciprocal(jnp.sum(p, axis=-1, keepdims=True), approx=False)
    att = jnp.einsum('gqk,gkd->gqd', p, v,
                     preferred_element_type=jnp.float32)        # (H*B, N, D)

    # --- head concat (lane concat) + ONE fused output projection -------------
    att = att.reshape(H, M, D)                                  # [h, m, d]
    att2d = jnp.concatenate([att[h] for h in range(H)], axis=-1)  # (M, H*D)
    out = jnp.dot(att2d, w[:, 3 * E:],
                  preferred_element_type=jnp.float32) + b[:, 3 * E:]   # (M, E)
    o_ref[...] = out.astype(o_ref.dtype)


# ------------------------------ wrapper --------------------------------------
def multi_head_attention(x, wqkv, bqkv, wpro, bpro):
    """x: (B, N, E) float32.  Weights in PyTorch nn.Linear layout:
       wqkv: (3E, E) with output features grouped '(h d qkv)' (einops order),
       bqkv: (3E,), wpro: (E, E), bpro: (E,)."""
    B, N, E = x.shape
    H, D = HEADS, HEAD_DIM
    assert E == EMB and E == H * D

    # ---- one-time plain-JAX weight repacking (outside the kernel) -----------
    # PyTorch output feature index f = h*(3*D) + d*3 + qkv_idx.
    w_r = wqkv.reshape(H, D, 3, E)                     # [h, d, qkv, e]
    b_r = bqkv.reshape(H, D, 3)                        # [h, d, qkv]

    def cols(i):                                       # (E_in, H*D), col = h*D+d
        return jnp.transpose(w_r[:, :, i, :], (2, 0, 1)).reshape(E, H * D)

    wq = cols(0) / SCALING                             # fold 1/scaling (exact /2)
    wk, wv = cols(1), cols(2)
    bq = (b_r[:, :, 0] / SCALING).reshape(1, H * D)
    bk = b_r[:, :, 1].reshape(1, H * D)
    bv = b_r[:, :, 2].reshape(1, H * D)

    # Pack everything into one weight slab + one bias row -> 3 input DMAs.
    w_all = jnp.concatenate([wq, wk, wv, wpro.T], axis=1)            # (E, 4E)
    b_all = jnp.concatenate([bq, bk, bv, bpro.reshape(1, E)], axis=1)  # (1, 4E)
    x2 = x.reshape(B * N, E)

    kernel = functools.partial(_mha_kernel, B=B, N=N, H=H, D=D, E=E)
    out2 = pl.pallas_call(
        kernel,
        out_shape=jax.ShapeDtypeStruct((B * N, E), jnp.float32),
        # Gridless call: each operand/result is one whole-array VMEM block.
        in_specs=[
            pl.BlockSpec(memory_space=pltpu.MemorySpace.VMEM),   # x2    (M, E)
            pl.BlockSpec(memory_space=pltpu.MemorySpace.VMEM),   # w_all (E, 4E)
            pl.BlockSpec(memory_space=pltpu.MemorySpace.VMEM),   # b_all (1, 4E)
        ],
        out_specs=pl.BlockSpec(memory_space=pltpu.MemorySpace.VMEM),
    )(x2, w_all, b_all)
    return out2.reshape(B, N, E)


# --------------------------- pure-JAX reference -------------------------------
def mha_reference(x, wqkv, bqkv, wpro, bpro):
    B, N, E = x.shape
    hp = jax.lax.Precision.HIGHEST
    qkv = jnp.dot(x, wqkv.T, precision=hp) + bqkv                   # (B, N, 3E)
    # rearrange 'b n (h d qkv) -> qkv b h n d'
    qkv = qkv.reshape(B, N, HEADS, HEAD_DIM, 3).transpose(4, 0, 2, 1, 3)
    q, k, v = qkv[0], qkv[1], qkv[2]                                # (B, H, N, D)
    energy = jnp.einsum("bhqd,bhkd->bhqk", q, k, precision=hp) / SCALING
    att = jax.nn.softmax(energy, axis=-1)
    out = jnp.einsum("bhal,bhlv->bhav", att, v, precision=hp)       # (B, H, N, D)
    out = out.transpose(0, 2, 1, 3).reshape(B, N, E)                # 'b h n d -> b n (h d)'
    return jnp.dot(out, wpro.T, precision=hp) + bpro


# ------------------------------- main -----------------------------------------
if __name__ == "__main__":
    key = jax.random.PRNGKey(0)
    kx, k1, k2, k3, k4 = jax.random.split(key, 5)

    x = jax.random.normal(kx, (BATCH, SEQ, EMB), dtype=jnp.float32)

    # Deterministic parameter init (PyTorch nn.Linear layout: (out, in)).
    wqkv = jax.random.normal(k1, (3 * EMB, EMB), dtype=jnp.float32) * 0.1
    bqkv = jax.random.normal(k2, (3 * EMB,), dtype=jnp.float32) * 0.1
    wpro = jax.random.normal(k3, (EMB, EMB), dtype=jnp.float32) * 0.1
    bpro = jax.random.normal(k4, (EMB,), dtype=jnp.float32) * 0.1

    out = jax.block_until_ready(multi_head_attention(x, wqkv, bqkv, wpro, bpro))

    ref = mha_reference(x, wqkv, bqkv, wpro, bpro)
    assert out.shape == (BATCH, SEQ, EMB)
    # Exact softmax reciprocal now -> tolerance tightened back (was 2e-3).
    assert jnp.allclose(out, ref, atol=1e-4, rtol=1e-4), "mismatch vs reference"

    print("KERNEL_OK")
</pallas_src>

<mosaic_0001>
module attributes {stable_mosaic.version = 11 : i64} {
  func.func @_mha_kernel(%arg0: memref<16x16xf32, #tpu.memory_space<vmem>>, %arg1: memref<16x64xf32, #tpu.memory_space<vmem>>, %arg2: memref<1x64xf32, #tpu.memory_space<vmem>>, %arg3: memref<16x16xf32, #tpu.memory_space<vmem>>) attributes {dimension_semantics = [], scalar_prefetch = 0 : i64, scratch_operands = 0 : i64, tpu.core_type = #tpu.core_type<tc>} {
    %c0 = arith.constant 0 : index
    %c0_0 = arith.constant 0 : index
    %0 = vector.load %arg0[%c0, %c0_0] : memref<16x16xf32, #tpu.memory_space<vmem>>, vector<16x16xf32>
    %c0_1 = arith.constant 0 : index
    %c0_2 = arith.constant 0 : index
    %1 = vector.load %arg1[%c0_1, %c0_2] : memref<16x64xf32, #tpu.memory_space<vmem>>, vector<16x64xf32>
    %c0_3 = arith.constant 0 : index
    %c0_4 = arith.constant 0 : index
    %2 = vector.load %arg2[%c0_3, %c0_4] : memref<1x64xf32, #tpu.memory_space<vmem>>, vector<1x64xf32>
    %3 = vector.extract_strided_slice %1 {offsets = [0, 0], sizes = [16, 48], strides = [1, 1]} : vector<16x64xf32> to vector<16x48xf32>
    %cst = arith.constant dense<0.000000e+00> : vector<16x48xf32>
    %4 = tpu.matmul %0, %3, %cst {dimension_numbers = #tpu.dot_dimension_numbers<[1], [0], [0], [1], [0, 0, 1, 1], [], []>} : vector<16x16xf32>, vector<16x48xf32>, vector<16x48xf32> -> vector<16x48xf32>
    %5 = vector.extract_strided_slice %2 {offsets = [0, 0], sizes = [1, 48], strides = [1, 1]} : vector<1x64xf32> to vector<1x48xf32>
    %6 = vector.broadcast %5 : vector<1x48xf32> to vector<16x48xf32>
    %7 = arith.addf %4, %6 : vector<16x48xf32>
    %8 = vector.extract_strided_slice %7 {offsets = [0, 0], sizes = [16, 4], strides = [1, 1]} : vector<16x48xf32> to vector<16x4xf32>
    %9 = vector.extract_strided_slice %7 {offsets = [0, 4], sizes = [16, 4], strides = [1, 1]} : vector<16x48xf32> to vector<16x4xf32>
    %10 = vector.extract_strided_slice %7 {offsets = [0, 8], sizes = [16, 4], strides = [1, 1]} : vector<16x48xf32> to vector<16x4xf32>
    %11 = vector.extract_strided_slice %7 {offsets = [0, 12], sizes = [16, 4], strides = [1, 1]} : vector<16x48xf32> to vector<16x4xf32>
    %12 = vector.shape_cast %8 : vector<16x4xf32> to vector<1x16x4xf32>
    %13 = vector.shape_cast %9 : vector<16x4xf32> to vector<1x16x4xf32>
    %14 = vector.shape_cast %10 : vector<16x4xf32> to vector<1x16x4xf32>
    %15 = vector.shape_cast %11 : vector<16x4xf32> to vector<1x16x4xf32>
    %16 = tpu.concatenate %12, %13, %14, %15 in 0 : vector<1x16x4xf32>, vector<1x16x4xf32>, vector<1x16x4xf32>, vector<1x16x4xf32> -> vector<4x16x4xf32>
    %17 = vector.shape_cast %16 : vector<4x16x4xf32> to vector<8x8x4xf32>
    %18 = vector.extract_strided_slice %7 {offsets = [0, 16], sizes = [16, 4], strides = [1, 1]} : vector<16x48xf32> to vector<16x4xf32>
    %19 = vector.extract_strided_slice %7 {offsets = [0, 20], sizes = [16, 4], strides = [1, 1]} : vector<16x48xf32> to vector<16x4xf32>
    %20 = vector.extract_strided_slice %7 {offsets = [0, 24], sizes = [16, 4], strides = [1, 1]} : vector<16x48xf32> to vector<16x4xf32>
    %21 = vector.extract_strided_slice %7 {offsets = [0, 28], sizes = [16, 4], strides = [1, 1]} : vector<16x48xf32> to vector<16x4xf32>
    %22 = vector.shape_cast %18 : vector<16x4xf32> to vector<1x16x4xf32>
    %23 = vector.shape_cast %19 : vector<16x4xf32> to vector<1x16x4xf32>
    %24 = vector.shape_cast %20 : vector<16x4xf32> to vector<1x16x4xf32>
    %25 = vector.shape_cast %21 : vector<16x4xf32> to vector<1x16x4xf32>
    %26 = tpu.concatenate %22, %23, %24, %25 in 0 : vector<1x16x4xf32>, vector<1x16x4xf32>, vector<1x16x4xf32>, vector<1x16x4xf32> -> vector<4x16x4xf32>
    %27 = vector.shape_cast %26 : vector<4x16x4xf32> to vector<8x8x4xf32>
    %28 = vector.extract_strided_slice %7 {offsets = [0, 32], sizes = [16, 4], strides = [1, 1]} : vector<16x48xf32> to vector<16x4xf32>
    %29 = vector.extract_strided_slice %7 {offsets = [0, 36], sizes = [16, 4], strides = [1, 1]} : vector<16x48xf32> to vector<16x4xf32>
    %30 = vector.extract_strided_slice %7 {offsets = [0, 40], sizes = [16, 4], strides = [1, 1]} : vector<16x48xf32> to vector<16x4xf32>
    %31 = vector.extract_strided_slice %7 {offsets = [0, 44], sizes = [16, 4], strides = [1, 1]} : vector<16x48xf32> to vector<16x4xf32>
    %32 = vector.shape_cast %28 : vector<16x4xf32> to vector<1x16x4xf32>
    %33 = vector.shape_cast %29 : vector<16x4xf32> to vector<1x16x4xf32>
    %34 = vector.shape_cast %30 : vector<16x4xf32> to vector<1x16x4xf32>
    %35 = vector.shape_cast %31 : vector<16x4xf32> to vector<1x16x4xf32>
    %36 = tpu.concatenate %32, %33, %34, %35 in 0 : vector<1x16x4xf32>, vector<1x16x4xf32>, vector<1x16x4xf32>, vector<1x16x4xf32> -> vector<4x16x4xf32>
    %37 = vector.shape_cast %36 : vector<4x16x4xf32> to vector<8x8x4xf32>
    "tpu.trace_start"() <{level = 10 : i32, message = "gqd,gkd->gqk"}> : () -> ()
    %cst_5 = arith.constant dense<0.000000e+00> : vector<8x8x8xf32>
    %38 = tpu.matmul %17, %27, %cst_5 {dimension_numbers = #tpu.dot_dimension_numbers<[2], [2], [1], [1], [0, 0, 0, 1, 1, 1], [0], [0]>} : vector<8x8x4xf32>, vector<8x8x4xf32>, vector<8x8x8xf32> -> vector<8x8x8xf32>
    "tpu.trace_stop"() : () -> ()
    %cst_6 = arith.constant dense<0xFF800000> : vector<8x8xf32>
    %39 = vector.multi_reduction <maximumf>, %38, %cst_6 [2] : vector<8x8x8xf32> to vector<8x8xf32>
    %40 = vector.shape_cast %39 : vector<8x8xf32> to vector<8x8x1xf32>
    %41 = vector.broadcast %40 : vector<8x8x1xf32> to vector<8x8x8xf32>
    %42 = arith.subf %38, %41 : vector<8x8x8xf32>
    %43 = math.exp %42 : vector<8x8x8xf32>
    %cst_7 = arith.constant dense<0.000000e+00> : vector<8x8xf32>
    %44 = vector.multi_reduction <add>, %43, %cst_7 [2] : vector<8x8x8xf32> to vector<8x8xf32>
    %45 = vector.shape_cast %44 : vector<8x8xf32> to vector<8x8x1xf32>
    %46 = tpu.reciprocal %45 : vector<8x8x1xf32> -> vector<8x8x1xf32>
    %47 = vector.broadcast %46 : vector<8x8x1xf32> to vector<8x8x8xf32>
    %48 = arith.mulf %43, %47 : vector<8x8x8xf32>
    "tpu.trace_start"() <{level = 10 : i32, message = "gqk,gkd->gqd"}> : () -> ()
    %cst_8 = arith.constant dense<0.000000e+00> : vector<8x8x4xf32>
    %49 = tpu.matmul %48, %37, %cst_8 {dimension_numbers = #tpu.dot_dimension_numbers<[2], [1], [1], [2], [0, 0, 0, 1, 1, 2], [0], [0]>} : vector<8x8x8xf32>, vector<8x8x4xf32>, vector<8x8x4xf32> -> vector<8x8x4xf32>
    "tpu.trace_stop"() : () -> ()
    %50 = vector.shape_cast %49 : vector<8x8x4xf32> to vector<4x16x4xf32>
    %51 = vector.extract_strided_slice %50 {offsets = [0, 0, 0], sizes = [1, 16, 4], strides = [1, 1, 1]} : vector<4x16x4xf32> to vector<1x16x4xf32>
    %52 = vector.shape_cast %51 : vector<1x16x4xf32> to vector<16x4xf32>
    %53 = vector.extract_strided_slice %50 {offsets = [1, 0, 0], sizes = [1, 16, 4], strides = [1, 1, 1]} : vector<4x16x4xf32> to vector<1x16x4xf32>
    %54 = vector.shape_cast %53 : vector<1x16x4xf32> to vector<16x4xf32>
    %55 = vector.extract_strided_slice %50 {offsets = [2, 0, 0], sizes = [1, 16, 4], strides = [1, 1, 1]} : vector<4x16x4xf32> to vector<1x16x4xf32>
    %56 = vector.shape_cast %55 : vector<1x16x4xf32> to vector<16x4xf32>
    %57 = vector.extract_strided_slice %50 {offsets = [3, 0, 0], sizes = [1, 16, 4], strides = [1, 1, 1]} : vector<4x16x4xf32> to vector<1x16x4xf32>
    %58 = vector.shape_cast %57 : vector<1x16x4xf32> to vector<16x4xf32>
    %59 = tpu.concatenate %52, %54, %56, %58 in 1 : vector<16x4xf32>, vector<16x4xf32>, vector<16x4xf32>, vector<16x4xf32> -> vector<16x16xf32>
    %60 = vector.extract_strided_slice %1 {offsets = [0, 48], sizes = [16, 16], strides = [1, 1]} : vector<16x64xf32> to vector<16x16xf32>
    %cst_9 = arith.constant dense<0.000000e+00> : vector<16x16xf32>
    %61 = tpu.matmul %59, %60, %cst_9 {dimension_numbers = #tpu.dot_dimension_numbers<[1], [0], [0], [1], [0, 0, 1, 1], [], []>} : vector<16x16xf32>, vector<16x16xf32>, vector<16x16xf32> -> vector<16x16xf32>
    %62 = vector.extract_strided_slice %2 {offsets = [0, 48], sizes = [1, 16], strides = [1, 1]} : vector<1x64xf32> to vector<1x16xf32>
    %63 = vector.broadcast %62 : vector<1x16xf32> to vector<16x16xf32>
    %64 = arith.addf %61, %63 : vector<16x16xf32>
    %c0_10 = arith.constant 0 : index
    %c0_11 = arith.constant 0 : index
    %65 = vector.load %arg3[%c0_10, %c0_11] : memref<16x16xf32, #tpu.memory_space<vmem>>, vector<16x16xf32>
    tpu.vector_store %arg3[%c0_10, %c0_11], %64 {strides = array<i32>} : memref<16x16xf32, #tpu.memory_space<vmem>>, vector<16x16xf32>,
    return
  }
}

</mosaic_0001>

<bundles_post_ra>
// kernel: tpu_custom_call.1
= control target key start
LH: loop header
LB: loop body
LE: loop exit
PB: predicated region body
PF: predicated region fallthrough
CT: control target
= control target key end

     0   :  { %8 = vsyncpa [#allocation3], 0  ;;  %s2116_s0 = inlined_call_operand.hbm [shape: f32[16,16], index: 0, kind: input, shape index: {}]   ;;  %s2117_s1 = inlined_call_operand.hbm [shape: f32[16,64], index: 1, kind: input, shape index: {}]   ;;  %s2118_s2 = inlined_call_operand.vmem [shape: f32[1,64], index: 2, kind: input, shape index: {}]   ;;  %s2119_s3 = inlined_call_operand.hbm [shape: f32[16,16], index: 3, kind: output, shape index: {}]  }
   0x1   :  { %9 = vsyncpa [#allocation6], 0 }
   0x2   :  { %10 = vsyncpa [#allocation4], 0  ;;  %s1875_s12 = smov [#allocation2]  }
   0x3   :  { %s16_s13 = sshll.u32 %s1875_s12, 4  ;;  %s17_s13 = int_to_ptr.vmem [resolvable:$true] %s16_s13 }
   0x4   :  { %s1817_s14 = scalar_lea.vmem %s17_s13, 256  ;;  %p1822_p1 = scmp.lt.s32.totalorder %s17_s13, %s17_s13 }
   0x5   :  { %p1818_p0 = scmp.ne.s32.totalorder %s17_s13, %s1817_s14  ;;  %p1823_p2 = scmp.lt.s32.totalorder %s1817_s14, %s1817_s14 }
   0x7   :  { %p1824_p3 = por %p1823_p2, %p1822_p1 }
   0x9   :  { %p1825_p4 = pnand %p1824_p3, %p1818_p0 }
   0xb   :  { %1828 = shalt.err (!%p1825_p4)
}
   0xc   :  { %s1876_s15 = smov 128   ;;  %s1877_s16 = smov 8  }
   0xd   :  { %22 = dma.hbm_to_vmem [thread:$0]  %s2116_s0, 256, %s17_s13, [#allocation3], %s1876_s15, %s1876_s15, %s1877_s16  }
   0xe   :  { %s1878_s19 = smov [#allocation5]  }
   0xf   :  { %s28_s20 = sshll.u32 %s1878_s19, 4  ;;  %s29_s20 = int_to_ptr.vmem [resolvable:$true] %s28_s20 }
  0x10   :  { %s1837_s21 = scalar_lea.vmem %s29_s20, 256  ;;  %p1842_p6 = scmp.lt.s32.totalorder %s29_s20, %s29_s20 }
  0x11   :  { %p1838_p5 = scmp.ne.s32.totalorder %s29_s20, %s1837_s21  ;;  %p1843_p7 = scmp.lt.s32.totalorder %s1837_s21, %s1837_s21 }
  0x13   :  { %p1844_p8 = por %p1843_p7, %p1842_p6 }
  0x15   :  { %p1845_p9 = pnand %p1844_p8, %p1838_p5 }
  0x17   :  { %1848 = shalt.err (!%p1845_p9)
}
  0x18   :  { %34 = dma.hbm_to_vmem [thread:$0]  %s2117_s1, 256, %s29_s20, [#allocation6], %s1876_s15, %s1876_s15, %s1877_s16  }
  0x19   :  { %1869 = dma.done.wait [#allocation3], 256  }
  0x1a   :  { %1870 = vsyncadd [#allocation3], 4294967040 }
  0x1b   :  { %1871 = dma.done.wait [#allocation6], 256  }
  0x1c   :  { %1872 = vsyncadd [#allocation6], 4294967040  ;;  %vm54_vm0 = vcmask 130048   ;;  %v1922_v0 = vld [vmem:[#allocation5 + $0x8] sm:$0xff]  ;;  %v1924_v1 = vld [vmem:[#allocation5] sm:$0xff]  ;;  %v1879_v5 = vmov 0.0  }
  0x1d   :  { %v43_v2 = vld [vmem:[#allocation2] sm:$0xff]  ;;  %1668 = vmatprep.subr.mxu0 %v1922_v0  ;;  %v44_v3 = vld [vmem:[#allocation2 + $0x8] sm:$0xff]  ;;  %1675 = vmatprep.subr.mxu1 %v1879_v5  ;;  %s1880_s24 = smov 120   ;;  %s1881_s25 = smov 124   ;;  %vm1882_vm1 = vmmov 0   ;;  %vm152_vm2 = vcmask 31744  }
  0x1e   :  { %1672 = vmatprep.mubr.msk.f32.mxu0 %vm54_vm0, %v43_v2  ;;  %1669 = vmatpush3.msra.mxu0 %v1922_v0  ;;  %v1937_v6 = vld [vmem:[%s2118_s2] ss:$0 sm:$0xff]  ;;  %s1883_s2 = smov 116   ;;  %s1884_s26 = smov 112   ;;  %vm759_vm3 = vcmask 64512   ;;  %vm1484_vm4 = vcmask 97280  }
  0x1f   :  { %1670 = vmatprep.subr.mxu0 %v1924_v1  ;;  %1677 = vmatprep.mubr.msk.f32.mxu1 %vm1882_vm1, %v1879_v5  ;;  %s1885_s27 = smov 96   ;;  %s1886_s28 = smov 80  }
  0x20   :  { %1671 = vmatpush3.msra.mxu0 %v1924_v1  ;;  %s1887_s29 = smov 4   ;;  %s1888_s30 = smov 12  }
  0x21   :  { %1673 = vmatmul.mubr.msk.f32.vlgmr.msra.gmra.mxu0 %vm54_vm0, %v44_v3  ;;  %1680 = vmatprep.subr.mxu0 %v1879_v5  ;;  %s1889_s4 = smov [#allocation7]  }
  0x22   :  { %1682 = vmatprep.mubr.msk.f32.mxu0 %vm1882_vm1, %v1879_v5  ;;  %s1586_s5 = sshll.u32 %s1889_s4, 4  ;;  %s1587_s5 = int_to_ptr.vmem [resolvable:$true] %s1586_s5 }
  0x23   :  { %s1849_s6 = scalar_lea.vmem %s1587_s5, 256  ;;  %p1854_p11 = scmp.lt.s32.totalorder %s1587_s5, %s1587_s5 }
  0x24   :  { %p1850_p10 = scmp.ne.s32.totalorder %s1587_s5, %s1849_s6  ;;  %p1855_p12 = scmp.lt.s32.totalorder %s1849_s6, %s1849_s6 }
  0x26   :  { %p1856_p13 = por %p1855_p12, %p1854_p11 }
  0x28   :  { %p1857_p0 = pnand %p1856_p13, %p1850_p10 }
  0xe1   :  { %v1674_v4 = vpop.f32.mrf.mxu0 }
  0xe2   :  { %v1949_v9 = vadd.f32 %v1674_v4, %v1937_v6 }
  0xe3   :  { %v127_v7 = vpop.f32.mrf.mxu0 }
  0xe4   :  { %v1940_v8 = vadd.f32 %v1937_v6, %v127_v7 }
  0xe6   :  { %142 = vrot.lane.b32.xlu1 %v1940_v8, %s1880_s24  ;;  %138 = vrot.lane.b32.xlu0 %v1940_v8, %s1881_s25 }
  0xea   :  { %144 = vrot.lane.b32.xlu1 %v1949_v9, %s1880_s24  ;;  %140 = vrot.lane.b32.xlu0 %v1949_v9, %s1881_s25 }
  0xee   :  { %148 = vrot.lane.b32.xlu1 %v1949_v9, %s1883_s2  ;;  %146 = vrot.lane.b32.xlu0 %v1940_v8, %s1883_s2 }
  0xf2   :  { %227 = vrot.lane.b32.xlu1 %v1949_v9, %s1884_s26  ;;  %150 = vrot.lane.b32.xlu0 %v1940_v8, %s1884_s26 }
 0x158   :  { %v1957_v10 = vpop.permute.xlu1 %142  ;;  %v1959_v11 = vpop.permute.xlu0 %138 }
 0x159   :  { %303 = vrot.lane.b32.xlu0 %v1959_v11, %s1884_s26 }
 0x15c   :  { %v1962_v12 = vpop.permute.xlu1 %144  ;;  %v1964_v13 = vpop.permute.xlu0 %140 }
 0x15d   :  { %455 = vrot.lane.b32.xlu0 %v1957_v10, %s1884_s26  ;;  %379 = vrot.lane.b32.xlu1 %v1964_v13, %s1884_s26 }
 0x160   :  { %v1968_v14 = vpop.permute.xlu1 %148  ;;  %v1970_v15 = vpop.permute.xlu0 %146 }
 0x161   :  { %531 = vrot.lane.b32.xlu1 %v1962_v12, %s1884_s26  ;;  %607 = vrot.lane.b32.xlu0 %v1970_v15, %s1884_s26 }
 0x164   :  { %v228_v16 = vpop.permute.xlu1 %227  ;;  %v151_v17 = vpop.permute.xlu0 %150 }
 0x165   :  { %1681 = vmatpush3.xpose.msk.msra.mxu0 %vm152_vm2, %v228_v16  ;;  %683 = vrot.lane.b32.xlu1 %v1968_v14, %s1884_s26 }
 0x166   :  { %1676 = vmatpush3.xpose.msk.msra.mxu1 %vm152_vm2, %v151_v17  ;;  %1690 = vmatprep.subr.mxu0 %v1879_v5 }
 0x167   :  { %1685 = vmatprep.subr.mxu1 %v1879_v5 }
 0x168   :  { %1683 = vmatmul.mubr.msk.f32.vlgmr.msra.gmra.mxu0 %vm152_vm2, %v1949_v9 }
 0x169   :  { %1678 = vmatmul.mubr.msk.f32.vlgmr.msra.gmra.mxu1 %vm152_vm2, %v1940_v8  ;;  %1692 = vmatprep.mubr.msk.f32.mxu0 %vm1882_vm1, %v1879_v5 }
 0x16a   :  { %1687 = vmatprep.mubr.msk.f32.mxu1 %vm1882_vm1, %v1879_v5 }
 0x1cb   :  { %v304_v18 = vpop.permute.xlu0 %303 }
 0x1cc   :  { %1686 = vmatpush3.xpose.msk.msra.mxu1 %vm152_vm2, %v304_v18 }
 0x1cd   :  { %1695 = vmatprep.subr.mxu1 %v1879_v5 }
 0x1cf   :  { %v380_v19 = vpop.permute.xlu1 %379  ;;  %1688 = vmatmul.mubr.msk.f32.vlgmr.msra.gmra.mxu1 %vm152_vm2, %v1959_v11  ;;  %v456_v20 = vpop.permute.xlu0 %455 }
 0x1d0   :  { %1691 = vmatpush3.xpose.msk.msra.mxu0 %vm152_vm2, %v380_v19  ;;  %1696 = vmatpush3.xpose.msk.msra.mxu1 %vm152_vm2, %v456_v20 }
 0x1d1   :  { %1697 = vmatprep.mubr.msk.f32.mxu1 %vm1882_vm1, %v1879_v5  ;;  %1700 = vmatprep.subr.mxu0 %v1879_v5 }
 0x1d2   :  { %1705 = vmatprep.subr.mxu1 %v1879_v5 }
 0x1d3   :  { %1693 = vmatmul.mubr.msk.f32.vlgmr.msra.gmra.mxu0 %vm152_vm2, %v1964_v13  ;;  %v532_v21 = vpop.permute.xlu1 %531  ;;  %1698 = vmatmul.mubr.msk.f32.vlgmr.msra.gmra.mxu1 %vm152_vm2, %v1957_v10  ;;  %v608_v22 = vpop.permute.xlu0 %607 }
 0x1d4   :  { %1701 = vmatpush3.xpose.msk.msra.mxu0 %vm152_vm2, %v532_v21  ;;  %1706 = vmatpush3.xpose.msk.msra.mxu1 %vm152_vm2, %v608_v22 }
 0x1d5   :  { %1702 = vmatprep.mubr.msk.f32.mxu0 %vm1882_vm1, %v1879_v5  ;;  %1707 = vmatprep.mubr.msk.f32.mxu1 %vm1882_vm1, %v1879_v5 }
 0x1d6   :  { %1710 = vmatprep.subr.mxu0 %v1879_v5  ;;  %1715 = vmatprep.subr.mxu1 %v1879_v5 }
 0x1d7   :  { %1703 = vmatmul.mubr.msk.f32.vlgmr.msra.gmra.mxu0 %vm152_vm2, %v1962_v12  ;;  %v684_v23 = vpop.permute.xlu1 %683  ;;  %1708 = vmatmul.mubr.msk.f32.vlgmr.msra.gmra.mxu1 %vm152_vm2, %v1970_v15 }
 0x1d8   :  { %1711 = vmatpush3.xpose.msk.msra.mxu0 %vm152_vm2, %v684_v23  ;;  %1712 = vmatprep.mubr.msk.f32.mxu0 %vm1882_vm1, %v1879_v5 }
 0x1d9   :  { %1720 = vmatprep.subr.mxu0 %v1879_v5  ;;  %1717 = vmatprep.mubr.msk.f32.mxu1 %vm1882_vm1, %v1879_v5 }
 0x1db   :  { %1713 = vmatmul.mubr.msk.f32.vlgmr.msra.gmra.mxu0 %vm152_vm2, %v1968_v14 }
 0x1dc   :  { %1722 = vmatprep.mubr.msk.f32.mxu0 %vm1882_vm1, %v1879_v5 }
 0x228   :  { %v299_v24 = vpop.f32.mrf.mxu0 }
 0x229   :  { %v223_v25 = vpop.f32.mrf.mxu1  ;;  %v763_v26 = vsel %vm759_vm3, %v299_v24, -inf }
 0x22a   :  { %v1684_v27 = vpop.f32.mrf.mxu0  ;;  %764 = vmax.xlane.f32.xlu1 %v763_v26  ;;  %v760_v28 = vsel %vm759_vm3, %v223_v25, -inf }
 0x22b   :  { %761 = vmax.xlane.f32.xlu0 %v760_v28  ;;  %v1679_v29 = vpop.f32.mrf.mxu1 }
 0x28f   :  { %v375_v30 = vpop.f32.mrf.mxu1 }
 0x290   :  { %v766_v31 = vsel %vm759_vm3, %v375_v30, -inf }
 0x291   :  { %767 = vmax.xlane.f32.xlu0 %v766_v31  ;;  %v1689_v32 = vpop.f32.mrf.mxu1 }
 0x293   :  { %v451_v33 = vpop.f32.mrf.mxu0  ;;  %v527_v34 = vpop.f32.mrf.mxu1 }
 0x294   :  { %v769_v35 = vsel %vm759_vm3, %v451_v33, -inf  ;;  %v772_v36 = vsel %vm759_vm3, %v527_v34, -inf }
 0x295   :  { %v1694_v37 = vpop.f32.mrf.mxu0  ;;  %770 = vmax.xlane.f32.xlu0 %v769_v35  ;;  %773 = vmax.xlane.f32.xlu1 %v772_v36  ;;  %v1699_v38 = vpop.f32.mrf.mxu1 }
 0x297   :  { %v603_v39 = vpop.f32.mrf.mxu0  ;;  %v679_v40 = vpop.f32.mrf.mxu1 }
 0x298   :  { %v775_v41 = vsel %vm759_vm3, %v603_v39, -inf  ;;  %v778_v42 = vsel %vm759_vm3, %v679_v40, -inf }
 0x299   :  { %v1704_v43 = vpop.f32.mrf.mxu0  ;;  %776 = vmax.xlane.f32.xlu0 %v775_v41  ;;  %779 = vmax.xlane.f32.xlu1 %v778_v42  ;;  %v1709_v44 = vpop.f32.mrf.mxu1 }
 0x29b   :  { %v755_v45 = vpop.f32.mrf.mxu0 }
 0x29c   :  { %v781_v46 = vsel %vm759_vm3, %v755_v45, -inf }
 0x29d   :  { %v1714_v47 = vpop.f32.mrf.mxu0  ;;  %782 = vmax.xlane.f32.xlu0 %v781_v46 }
 0x2aa   :  { %848 = vrot.lane.b32.xlu1 %v1940_v8, %s1885_s27 }
 0x2ae   :  { %1000 = vrot.lane.b32.xlu1 %v1959_v11, %s1885_s27 }
 0x2b2   :  { %1076 = vrot.lane.b32.xlu1 %v1964_v13, %s1885_s27 }
 0x2b3   :  { %924 = vrot.lane.b32.xlu0 %v1949_v9, %s1885_s27  ;;  %v765_v48 = vpop.xlane.xlu1 %764 }
 0x2b4   :  { %v785_v49 = vsub.f32 %v299_v24, %v765_v48  ;;  %v762_v50 = vpop.xlane.xlu0 %761 }
 0x2b5   :  { %v784_v52 = vsub.f32 %v223_v25, %v762_v50 }
 0x2b6   :  { %1228 = vrot.lane.b32.xlu1 %v1962_v12, %s1885_s27  ;;  %v794_v51 = vmul.f32 1.442695, %v785_v49 }
 0x2b7   :  { %1152 = vrot.lane.b32.xlu0 %v1957_v10, %s1885_s27  ;;  %v792_v53 = vmul.f32 1.442695, %v784_v52 }
 0x2b8   :  { %1777 = vpow2.f32 %v794_v51 }
 0x2b9   :  { %1779 = vpow2.f32 %v792_v53 }
 0x2c5   :  { %v2043_v54 = vpop.eup %1777 }
 0x2c6   :  { %v811_v55 = vsel %vm759_vm3, %v2043_v54, 0.0  ;;  %v2047_v56 = vpop.eup %1779 }
 0x2c7   :  { %v808_v57 = vsel %vm759_vm3, %v2047_v56, 0.0 }
 0x2d6   :  { %812 = vadd.xlane.f32.xlu0 %v811_v55 }
 0x2da   :  { %809 = vadd.xlane.f32.xlu1 %v808_v57 }
 0x31a   :  { %v768_v58 = vpop.xlane.xlu0 %767 }
 0x31b   :  { %v786_v59 = vsub.f32 %v375_v30, %v768_v58 }
 0x31d   :  { %v796_v60 = vmul.f32 1.442695, %v786_v59 }
 0x31e   :  { %v774_v61 = vpop.xlane.xlu1 %773  ;;  %v771_v62 = vpop.xlane.xlu0 %770 }
 0x31f   :  { %1781 = vpow2.f32 %v796_v60  ;;  %v788_v63 = vsub.f32 %v527_v34, %v774_v61  ;;  %v787_v2 = vsub.f32 %v451_v33, %v771_v62 }
 0x321   :  { %v800_v3 = vmul.f32 1.442695, %v788_v63  ;;  %v798_v4 = vmul.f32 1.442695, %v787_v2 }
 0x322   :  { %v780_v7 = vpop.xlane.xlu1 %779  ;;  %v777_v8 = vpop.xlane.xlu0 %776 }
 0x323   :  { %1783 = vpow2.f32 %v800_v3  ;;  %v790_v9 = vsub.f32 %v679_v40, %v780_v7  ;;  %v789_v10 = vsub.f32 %v603_v39, %v777_v8 }
 0x324   :  { %1785 = vpow2.f32 %v798_v4 }
 0x325   :  { %v804_v11 = vmul.f32 1.442695, %v790_v9  ;;  %v802_v12 = vmul.f32 1.442695, %v789_v10 }
 0x326   :  { %v849_v13 = vpop.permute.xlu1 %848  ;;  %v783_v16 = vpop.xlane.xlu0 %782 }
 0x327   :  { %1787 = vpow2.f32 %v804_v11  ;;  %v791_v17 = vsub.f32 %v755_v45, %v783_v16  ;;  %1716 = vmatpush3.msra.mxu1 %v849_v13 }
 0x328   :  { %1789 = vpow2.f32 %v802_v12  ;;  %1725 = vmatprep.subr.mxu1 %v1879_v5 }
 0x329   :  { %v806_v18 = vmul.f32 1.442695, %v791_v17 }
 0x32a   :  { %v925_v19 = vpop.permute.xlu0 %924  ;;  %v1001_v32 = vpop.permute.xlu1 %1000 }
 0x32b   :  { %1791 = vpow2.f32 %v806_v18  ;;  %1721 = vmatpush3.msra.mxu0 %v925_v19 }
 0x32c   :  { %v1782_v20 = vpop.eup %1781  ;;  %1730 = vmatprep.subr.mxu0 %v1879_v5 }
 0x32d   :  { %v814_v21 = vsel %vm759_vm3, %v1782_v20, 0.0 }
 0x32e   :  { %815 = vadd.xlane.f32.xlu1 %v814_v21  ;;  %v1077_v33 = vpop.permute.xlu1 %1076  ;;  %v1153_v34 = vpop.permute.xlu0 %1152 }
 0x330   :  { %v1784_v22 = vpop.eup %1783 }
 0x331   :  { %v1786_v23 = vpop.eup %1785  ;;  %v820_v24 = vsel %vm759_vm3, %v1784_v22, 0.0 }
 0x332   :  { %821 = vadd.xlane.f32.xlu1 %v820_v24  ;;  %v817_v25 = vsel %vm759_vm3, %v1786_v23, 0.0  ;;  %v1229_v35 = vpop.permute.xlu1 %1228 }
 0x333   :  { %818 = vadd.xlane.f32.xlu0 %v817_v25 }
 0x334   :  { %v1788_v26 = vpop.eup %1787 }
 0x335   :  { %v2056_v27 = vpop.eup %1789  ;;  %v826_v28 = vsel %vm759_vm3, %v1788_v26, 0.0 }
 0x336   :  { %827 = vadd.xlane.f32.xlu1 %v826_v28  ;;  %v823_v29 = vsel %vm759_vm3, %v2056_v27, 0.0 }
 0x337   :  { %824 = vadd.xlane.f32.xlu0 %v823_v29 }
 0x338   :  { %v2061_v30 = vpop.eup %1791 }
 0x339   :  { %v829_v31 = vsel %vm759_vm3, %v2061_v30, 0.0 }
 0x33b   :  { %830 = vadd.xlane.f32.xlu0 %v829_v31 }
 0x347   :  { %1380 = vrot.lane.b32.xlu1 %v1968_v14, %s1885_s27 }
 0x34b   :  { %1491 = vrot.lane.b32.xlu1 %v1922_v0, %s1886_s28 }
 0x351   :  { %1304 = vrot.lane.b32.xlu0 %v1970_v15, %s1885_s27 }
 0x35f   :  { %v813_v36 = vpop.xlane.xlu0 %812 }
 0x360   :  { %1793 = vrcp.f32 %v813_v36 }
 0x363   :  { %v810_v37 = vpop.xlane.xlu1 %809 }
 0x364   :  { %1795 = vrcp.f32 %v810_v37 }
 0x36d   :  { %v1794_v38 = vpop.eup %1793 }
 0x36e   :  { %v841_v39 = vmul.f32 %v1794_v38, %v2043_v54 }
 0x370   :  { %1723 = vmatmul.mubr.msk.f32.vlgmr.msra.gmra.mxu0 %vm759_vm3, %v841_v39 }
 0x371   :  { %v1796_v40 = vpop.eup %1795  ;;  %1731 = vmatpush3.msra.mxu0 %v1077_v33  ;;  %1732 = vmatprep.mubr.msk.f32.mxu0 %vm1882_vm1, %v1879_v5 }
 0x372   :  { %v840_v14 = vmul.f32 %v1796_v40, %v2047_v56  ;;  %1740 = vmatprep.subr.mxu0 %v1879_v5 }
 0x374   :  { %1718 = vmatmul.mubr.msk.f32.vlgmr.msra.gmra.mxu1 %vm759_vm3, %v840_v14 }
 0x375   :  { %1726 = vmatpush3.msra.mxu1 %v1001_v32  ;;  %1727 = vmatprep.mubr.msk.f32.mxu1 %vm1882_vm1, %v1879_v5 }
 0x376   :  { %1735 = vmatprep.subr.mxu1 %v1879_v5 }
 0x3b7   :  { %v816_v15 = vpop.xlane.xlu1 %815 }
 0x3b8   :  { %1797 = vrcp.f32 %v816_v15 }
 0x3bb   :  { %v822_v41 = vpop.xlane.xlu1 %821 }
 0x3bc   :  { %1799 = vrcp.f32 %v822_v41  ;;  %v819_v42 = vpop.xlane.xlu0 %818 }
 0x3bd   :  { %1801 = vrcp.f32 %v819_v42 }
 0x3bf   :  { %v828_v43 = vpop.xlane.xlu1 %827 }
 0x3c0   :  { %1803 = vrcp.f32 %v828_v43  ;;  %v825_v44 = vpop.xlane.xlu0 %824 }
 0x3c1   :  { %1805 = vrcp.f32 %v825_v44 }
 0x3c3   :  { %v1381_v57 = vpop.permute.xlu1 %1380 }
 0x3c4   :  { %v831_v45 = vpop.xlane.xlu0 %830 }
 0x3c5   :  { %v1798_v46 = vpop.eup %1797  ;;  %1807 = vrcp.f32 %v831_v45 }
 0x3c6   :  { %v842_v47 = vmul.f32 %v1798_v46, %v1782_v20 }
 0x3c7   :  { %v1492_v2 = vpop.permute.xlu1 %1491 }
 0x3c8   :  { %1728 = vmatmul.mubr.msk.f32.vlgmr.msra.gmra.mxu1 %vm759_vm3, %v842_v47  ;;  %v1305_v52 = vpop.permute.xlu0 %1304 }
 0x3c9   :  { %v1800_v48 = vpop.eup %1799  ;;  %1736 = vmatpush3.msra.mxu1 %v1153_v34  ;;  %1737 = vmatprep.mubr.msk.f32.mxu1 %vm1882_vm1, %v1879_v5 }
 0x3ca   :  { %v1802_v49 = vpop.eup %1801  ;;  %1745 = vmatprep.subr.mxu1 %v1879_v5  ;;  %v844_v50 = vmul.f32 %v1800_v48, %v1784_v22 }
 0x3cb   :  { %v843_v51 = vmul.f32 %v1802_v49, %v1786_v23 }
 0x3cc   :  { %1738 = vmatmul.mubr.msk.f32.vlgmr.msra.gmra.mxu1 %vm759_vm3, %v844_v50 }
 0x3cd   :  { %v1804_v53 = vpop.eup %1803  ;;  %1733 = vmatmul.mubr.msk.f32.vlgmr.msra.gmra.mxu0 %vm759_vm3, %v843_v51  ;;  %1746 = vmatpush3.msra.mxu1 %v1305_v52 }
 0x3ce   :  { %v1806_v54 = vpop.eup %1805  ;;  %1741 = vmatpush3.msra.mxu0 %v1229_v35  ;;  %1742 = vmatprep.mubr.msk.f32.mxu0 %vm1882_vm1, %v1879_v5  ;;  %v846_v55 = vmul.f32 %v1804_v53, %v1788_v26 }
 0x3cf   :  { %1747 = vmatprep.mubr.msk.f32.mxu1 %vm1882_vm1, %v1879_v5  ;;  %1750 = vmatprep.subr.mxu0 %v1879_v5  ;;  %v845_v56 = vmul.f32 %v1806_v54, %v2056_v27 }
 0x3d0   :  { %1748 = vmatmul.mubr.msk.f32.vlgmr.msra.gmra.mxu1 %vm759_vm3, %v846_v55  ;;  %1755 = vmatprep.subr.mxu1 %v1492_v2 }
 0x3d1   :  { %1743 = vmatmul.mubr.msk.f32.vlgmr.msra.gmra.mxu0 %vm759_vm3, %v845_v56  ;;  %1756 = vmatpush3.msra.mxu1 %v1492_v2 }
 0x3d2   :  { %v1808_v58 = vpop.eup %1807  ;;  %1751 = vmatpush3.msra.mxu0 %v1381_v57  ;;  %1752 = vmatprep.mubr.msk.f32.mxu0 %vm1882_vm1, %v1879_v5 }
 0x3d3   :  { %v847_v59 = vmul.f32 %v1808_v58, %v2061_v30 }
 0x3d5   :  { %1753 = vmatmul.mubr.msk.f32.vlgmr.msra.gmra.mxu0 %vm759_vm3, %v847_v59 }
 0x430   :  { %v996_v60 = vpop.f32.mrf.mxu0 }
 0x432   :  { %v1724_v61 = vpop.f32.mrf.mxu0 }
 0x434   :  { %v920_v62 = vpop.f32.mrf.mxu1 }
 0x436   :  { %v1719_v63 = vpop.f32.mrf.mxu1 }
 0x488   :  { %v1072_v3 = vpop.f32.mrf.mxu1 }
 0x48a   :  { %v1729_v4 = vpop.f32.mrf.mxu1 }
 0x48c   :  { %v1224_v7 = vpop.f32.mrf.mxu1 }
 0x48d   :  { %v1148_v8 = vpop.f32.mrf.mxu0  ;;  %1466 = vrot.lane.b32.xlu1 %v1224_v7, %s1877_s16 }
 0x48e   :  { %1460 = vrot.lane.b32.xlu0 %v1148_v8, %s1887_s29  ;;  %v1739_v5 = vpop.f32.mrf.mxu1 }
 0x48f   :  { %v1734_v9 = vpop.f32.mrf.mxu0 }
 0x490   :  { %v1376_v10 = vpop.f32.mrf.mxu1 }
 0x491   :  { %v1300_v11 = vpop.f32.mrf.mxu0  ;;  %1474 = vrot.lane.b32.xlu1 %v1376_v10, %s1888_s30 }
 0x492   :  { %1458 = vrot.lane.b32.xlu0 %v1072_v3, %s1887_s29  ;;  %v1749_v0 = vpop.f32.mrf.mxu1 }
 0x493   :  { %v1744_v12 = vpop.f32.mrf.mxu0 }
 0x495   :  { %v1452_v13 = vpop.f32.mrf.mxu0 }
 0x496   :  { %1468 = vrot.lane.b32.xlu0 %v1300_v11, %s1877_s16  ;;  %1476 = vrot.lane.b32.xlu1 %v1452_v13, %s1888_s30 }
 0x497   :  { %v1754_v16 = vpop.f32.mrf.mxu0 }
 0x49a   :  { %1489 = vrot.lane.b32.xlu0 %v1924_v1, %s1886_s28 }
 0x49e   :  { %1495 = vrot.lane.b32.xlu0 %v1937_v6, %s1886_s28 }
 0x4ff   :  { %v1467_v17 = vpop.permute.xlu1 %1466 }
 0x500   :  { %v1461_v18 = vpop.permute.xlu0 %1460 }
 0x501   :  { %v1481_v25 = vsel %vm152_vm2, %v996_v60, %v1461_v18 }
 0x503   :  { %v1475_v20 = vpop.permute.xlu1 %1474 }
 0x504   :  { %v1459_v19 = vpop.permute.xlu0 %1458 }
 0x505   :  { %v1480_v21 = vsel %vm152_vm2, %v920_v62, %v1459_v19 }
 0x506   :  { %v1482_v22 = vsel %vm759_vm3, %v1480_v21, %v1467_v17 }
 0x507   :  { %v1485_v23 = vsel %vm1484_vm4, %v1482_v22, %v1475_v20 }
 0x508   :  { %1759 = vmatprep.mubr.msk.f32.mxu1 %vm54_vm0, %v1485_v23  ;;  %v1469_v24 = vpop.permute.xlu0 %1468  ;;  %v1477_v26 = vpop.permute.xlu1 %1476 }
 0x509   :  { %v1483_v1 = vsel %vm759_vm3, %v1481_v25, %v1469_v24 }
 0x50a   :  { %v1486_v6 = vsel %vm1484_vm4, %v1483_v1, %v1477_v26 }
 0x50c   :  { %v1490_v27 = vpop.permute.xlu0 %1489 }
 0x50d   :  { %1757 = vmatprep.subr.mxu1 %v1490_v27 }
 0x50e   :  { %1758 = vmatpush3.msra.mxu1 %v1490_v27 }
 0x50f   :  { %1760 = vmatmul.mubr.msk.f32.vlgmr.msra.gmra.mxu1 %vm54_vm0, %v1486_v6 }
 0x510   :  { %v1496_v28 = vpop.permute.xlu0 %1495 }
 0x5cf   :  { %v1761_v29 = vpop.f32.mrf.mxu1 }
 0x5d0   :  { %v1576_v30 = vadd.f32 %v1761_v29, %v1496_v28 }
 0x5d1   :  { %v1570_v31 = vpop.f32.mrf.mxu1 }
 0x5d2   :  { %1580 = vst.msk [vmem:[#allocation7 + $0x8] sm:$0xff] %vm54_vm0, %v1576_v30  ;;  %v1571_v32 = vadd.f32 %v1570_v31, %v1496_v28 }
 0x5d4   :  { %1579 = vst.msk [vmem:[#allocation7] sm:$0xff] %vm54_vm0, %v1571_v32 }
 0x5d5   :  { %1860 = shalt.err (!%p1857_p0)
}
 0x5d6   :  { %1592 = dma.vmem_to_hbm [thread:$0]  %s1587_s5, 256, %s2119_s3, [#allocation4], %s1876_s15, %s1876_s15, %s1877_s16  }
 0x5d7   :  { %1873 = dma.done.wait [#allocation4], 256  }
 0x5d8   :  { %1874 = vsyncadd [#allocation4], 4294967040 }
 0x5d9   :  { %1596 = vsyncpa [#allocation3], 1 }
 0x5da   :  { %1597 = vsyncpa [#allocation6], 1 }
 0x5db   :  { %1598 = vsyncpa [#allocation4], 1 }

</bundles_post_ra>
